<compile_context>
chip_gen: v7x
topology: tpu7x:2x2x1
jax: 0.10.0
libtpu: 0.0.40
codegen_flags: <defaults>
</compile_context>

<pallas_src>
import numpy as np

import jax
import jax.numpy as jnp
from jax import lax
from jax.experimental import pallas as pl
from jax.experimental.pallas import tpu as pltpu

EPS = 1e-5


def _conv_bn_relu(pad_ref, wb_ref, s_ref, st_ref, g_ref, b_ref, n, hp):
    """3 banded matmuls (one per kernel row) + fused batch-stat BN + ReLU.

    pad_ref: (n, hp+2, K)  H-zero-padded, lane-fused activations
    wb_ref : (3, K, wp*c)  block-banded weights (W taps + W padding folded in)
    s_ref  : (wp*c, c)     lane -> channel selector     (sum over W positions)
    st_ref : (c, wp*c)     channel -> lane broadcaster
    g_ref, b_ref: (1, c)   BN gamma / beta
    returns: (n*hp, wp*c) float32
    """
    K = pad_ref.shape[-1]
    wpc = wb_ref.shape[-1]
    c = g_ref.shape[-1]
    wp = wpc // c
    cnt = float(n * hp * wp)          # elements per channel (N * H/2 * W/2)

    acc = jnp.zeros((n * hp, wpc), dtype=jnp.float32)
    for ki in range(3):               # statically unrolled kernel rows
        lhs = pad_ref[:, ki:ki + hp, :].reshape(n * hp, K)
        acc = acc + jnp.dot(lhs, wb_ref[ki],
                            preferred_element_type=jnp.float32)

    # BatchNorm, training-mode semantics (batch mean, biased variance),
    # fused single pass: var = E[x^2] - mean^2, y = acc*scale + shift.
    rs = jnp.sum(acc, axis=0, keepdims=True)          # (1, wp*c)
    rss = jnp.sum(acc * acc, axis=0, keepdims=True)   # (1, wp*c)
    sel = s_ref[...]
    mean = jnp.dot(rs, sel, preferred_element_type=jnp.float32) / cnt   # (1, c)
    ex2 = jnp.dot(rss, sel, preferred_element_type=jnp.float32) / cnt   # (1, c)
    var = ex2 - mean * mean
    scale_c = g_ref[...] * lax.rsqrt(var + EPS)       # (1, c)
    shift_c = b_ref[...] - mean * scale_c             # (1, c)
    bcast = st_ref[...]
    scale_l = jnp.dot(scale_c, bcast, preferred_element_type=jnp.float32)
    shift_l = jnp.dot(shift_c, bcast, preferred_element_type=jnp.float32)
    return jnp.maximum(acc * scale_l + shift_l, 0.0)  # ReLU


def down_kernel(x_ref, wb1_ref, s1_ref, st1_ref, g1_ref, b1_ref,
                wb2_ref, s2_ref, st2_ref, g2_ref, b2_ref,
                out_ref, pad1_ref, pad2_ref):
    n, h, wc = x_ref.shape            # x lane-fused: (n, H, W*Cin)
    hp = h // 2
    K1 = pad1_ref.shape[-1]           # (W-1)*Cin
    cin = wc - K1                     # W*Cin - (W-1)*Cin
    Kmid = pad2_ref.shape[-1]         # (W/2)*Cmid

    # ---- MaxPool2d(2): H pairs via two stride-2 row reads (cheap, leading
    # dim is batch; H is sublane), W pairs via a lane shift + max.  Odd W
    # positions in `mw` are dead lanes multiplied by zero rows of wb1.
    xa = x_ref[:, pl.ds(0, hp, 2), :]                 # rows 0,2,4,...
    xb = x_ref[:, pl.ds(1, hp, 2), :]                 # rows 1,3,5,...
    hm = jnp.maximum(xa, xb)                          # (n, hp, W*Cin)
    mw = jnp.maximum(hm[:, :, :K1], hm[:, :, cin:])   # (n, hp, (W-1)*Cin)

    # ---- H zero-padding: only the two border rows are zeroed.
    zrow1 = jnp.zeros((n, 1, K1), jnp.float32)
    pad1_ref[:, 0:1, :] = zrow1
    pad1_ref[:, hp + 1:hp + 2, :] = zrow1
    pad1_ref[:, 1:hp + 1, :] = mw

    # ---- Conv1 + BN + ReLU ----
    y1 = _conv_bn_relu(pad1_ref, wb1_ref, s1_ref, st1_ref,
                       g1_ref, b1_ref, n, hp)         # (n*hp, wp*Cmid)

    zrow2 = jnp.zeros((n, 1, Kmid), jnp.float32)
    pad2_ref[:, 0:1, :] = zrow2
    pad2_ref[:, hp + 1:hp + 2, :] = zrow2
    pad2_ref[:, 1:hp + 1, :] = y1.reshape(n, hp, Kmid)

    # ---- Conv2 + BN + ReLU ----
    y2 = _conv_bn_relu(pad2_ref, wb2_ref, s2_ref, st2_ref,
                       g2_ref, b2_ref, n, hp)         # (n*hp, wp*Cout)

    out_ref[...] = y2                                  # lane-dense 2-D slab


def _band_weights(w_hwio, nblocks_in, out_w, stride):
    """Expand HWIO (3,3,ci,co) weights into 3 block-banded matrices.

    Result[ki][stride*(ox+kj-1)*ci + c_in, ox*co + c_out] = w[ki, kj, c_in, c_out]
    for valid 0 <= ox+kj-1 < out_w; everything else is zero (this implements
    both the W zero-padding and, for conv1 with stride=2, the selection of the
    even (pooled) W positions).
    """
    kh, kw, ci, co = w_hwio.shape
    mats = []
    for ki in range(kh):
        m = jnp.zeros((nblocks_in * ci, out_w * co), jnp.float32)
        for kj in range(kw):
            e = np.zeros((nblocks_in, out_w), np.float32)
            for ox in range(out_w):
                j = ox + kj - 1
                if 0 <= j < out_w:
                    e[stride * j, ox] = 1.0
            m = m + jnp.kron(jnp.asarray(e), w_hwio[ki, kj].astype(jnp.float32))
        mats.append(m)
    return jnp.stack(mats, axis=0)


def down_forward(x_nchw, params):
    """Wrapper matching the PyTorch module interface (NCHW in / NCHW out)."""
    w1, g1, b1, w2, g2, b2 = params
    n, cin, h, w = x_nchw.shape
    assert h % 2 == 0 and w % 2 == 0
    hp, wp = h // 2, w // 2
    cmid, cout = w1.shape[-1], w2.shape[-1]
    K1 = (w - 1) * cin

    # Layout plumbing (free, outside the kernel): NCHW -> lane-fused (n,H,W*C).
    x_fused = jnp.transpose(x_nchw, (0, 2, 3, 1)).reshape(n, h, w * cin)
    x_fused = x_fused.astype(jnp.float32)

    # Precompute banded weights + BN lane<->channel selector matrices (tiny).
    wb1 = _band_weights(w1, nblocks_in=w - 1, out_w=wp, stride=2)   # (3, K1, wp*cmid)
    wb2 = _band_weights(w2, nblocks_in=wp, out_w=wp, stride=1)      # (3, wp*cmid, wp*cout)
    s1 = jnp.tile(jnp.eye(cmid, dtype=jnp.float32), (wp, 1))        # (wp*cmid, cmid)
    s2 = jnp.tile(jnp.eye(cout, dtype=jnp.float32), (wp, 1))        # (wp*cout, cout)

    out2d = pl.pallas_call(
        down_kernel,
        out_shape=jax.ShapeDtypeStruct((n * hp, wp * cout), jnp.float32),
        in_specs=[pl.BlockSpec(memory_space=pltpu.MemorySpace.VMEM)] * 11,
        out_specs=pl.BlockSpec(memory_space=pltpu.MemorySpace.VMEM),
        scratch_shapes=[
            pltpu.VMEM((n, hp + 2, K1), jnp.float32),          # H-padded pool out
            pltpu.VMEM((n, hp + 2, wp * cmid), jnp.float32),   # H-padded conv1 out
        ],
        compiler_params=pltpu.CompilerParams(
            vmem_limit_bytes=32 * 1024 * 1024),
    )(x_fused, wb1, s1, s1.T, g1.reshape(1, -1), b1.reshape(1, -1),
      wb2, s2, s2.T, g2.reshape(1, -1), b2.reshape(1, -1))

    # Undo the lane-dense output layout (free XLA glue): -> NCHW.
    return jnp.transpose(out2d.reshape(n, hp, wp, cout), (0, 3, 1, 2))


def ref_forward(x_nchw, params):
    """Pure-JAX reference (mirrors PyTorch training-mode forward)."""
    w1, g1, b1, w2, g2, b2 = params
    n, c, h, w = x_nchw.shape
    xp = x_nchw.reshape(n, c, h // 2, 2, w // 2, 2).max(axis=(3, 5))

    def conv_bn_relu(x, wh, g, b):
        y = lax.conv_general_dilated(x, wh, (1, 1), 'SAME',
                                     dimension_numbers=('NCHW', 'HWIO', 'NCHW'))
        mean = y.mean(axis=(0, 2, 3), keepdims=True)
        var = ((y - mean) ** 2).mean(axis=(0, 2, 3), keepdims=True)
        y = (y - mean) * (g.reshape(1, -1, 1, 1) * lax.rsqrt(var + EPS)) \
            + b.reshape(1, -1, 1, 1)
        return jnp.maximum(y, 0.0)

    return conv_bn_relu(conv_bn_relu(xp, w1, g1, b1), w2, g2, b2)


def init_params(key, in_channels, out_channels):
    mid_channels = out_channels
    k = jax.random.split(key, 6)
    w1 = 0.1 * jax.random.normal(k[0], (3, 3, in_channels, mid_channels), jnp.float32)
    g1 = 1.0 + 0.1 * jax.random.normal(k[1], (mid_channels,), jnp.float32)
    b1 = 0.1 * jax.random.normal(k[2], (mid_channels,), jnp.float32)
    w2 = 0.1 * jax.random.normal(k[3], (3, 3, mid_channels, out_channels), jnp.float32)
    g2 = 1.0 + 0.1 * jax.random.normal(k[4], (out_channels,), jnp.float32)
    b2 = 0.1 * jax.random.normal(k[5], (out_channels,), jnp.float32)
    return (w1, g1, b1, w2, g2, b2)


if __name__ == "__main__":
    key = jax.random.PRNGKey(0)
    kx, kp = jax.random.split(key)

    N, C_IN, C_OUT, H, W = 2, 4, 8, 16, 16
    x = jax.random.normal(kx, (N, C_IN, H, W), jnp.float32)     # NCHW like PyTorch
    params = init_params(kp, C_IN, C_OUT)

    out = jax.block_until_ready(down_forward(x, params))
    ref = jax.block_until_ready(ref_forward(x, params))

    assert out.shape == (N, C_OUT, H // 2, W // 2), out.shape
    assert jnp.allclose(out, ref, rtol=1e-2, atol=1e-2), \
        float(jnp.max(jnp.abs(out - ref)))

    print("KERNEL_OK")
</pallas_src>

<mosaic_0001>
module attributes {stable_mosaic.version = 11 : i64} {
  func.func @down_kernel(%arg0: memref<2x16x64xf32, #tpu.memory_space<vmem>>, %arg1: memref<3x60x64xf32, #tpu.memory_space<vmem>>, %arg2: memref<64x8xf32, #tpu.memory_space<vmem>>, %arg3: memref<8x64xf32, #tpu.memory_space<vmem>>, %arg4: memref<1x8xf32, #tpu.memory_space<vmem>>, %arg5: memref<1x8xf32, #tpu.memory_space<vmem>>, %arg6: memref<3x64x64xf32, #tpu.memory_space<vmem>>, %arg7: memref<64x8xf32, #tpu.memory_space<vmem>>, %arg8: memref<8x64xf32, #tpu.memory_space<vmem>>, %arg9: memref<1x8xf32, #tpu.memory_space<vmem>>, %arg10: memref<1x8xf32, #tpu.memory_space<vmem>>, %arg11: memref<16x64xf32, #tpu.memory_space<vmem>>, %arg12: memref<2x10x60xf32, #tpu.memory_space<vmem>>, %arg13: memref<2x10x64xf32, #tpu.memory_space<vmem>>) attributes {dimension_semantics = [], scalar_prefetch = 0 : i64, scratch_operands = 2 : i64, tpu.core_type = #tpu.core_type<tc>} {
    %c0 = arith.constant 0 : index
    %c0_0 = arith.constant 0 : index
    %c0_1 = arith.constant 0 : index
    %0 = tpu.strided_load %arg0[%c0, %c0_0, %c0_1] {strides = array<i32: 1, 2, 1>} : memref<2x16x64xf32, #tpu.memory_space<vmem>>, vector<2x8x64xf32>
    %c0_2 = arith.constant 0 : index
    %c1 = arith.constant 1 : index
    %c0_3 = arith.constant 0 : index
    %1 = tpu.strided_load %arg0[%c0_2, %c1, %c0_3] {strides = array<i32: 1, 2, 1>} : memref<2x16x64xf32, #tpu.memory_space<vmem>>, vector<2x8x64xf32>
    %2 = arith.maximumf %0, %1 : vector<2x8x64xf32>
    %3 = vector.extract_strided_slice %2 {offsets = [0, 0, 0], sizes = [2, 8, 60], strides = [1, 1, 1]} : vector<2x8x64xf32> to vector<2x8x60xf32>
    %4 = vector.extract_strided_slice %2 {offsets = [0, 0, 4], sizes = [2, 8, 60], strides = [1, 1, 1]} : vector<2x8x64xf32> to vector<2x8x60xf32>
    %5 = arith.maximumf %3, %4 : vector<2x8x60xf32>
    %cst = arith.constant 0.000000e+00 : f32
    %6 = vector.broadcast %cst : f32 to vector<2x1x60xf32>
    %c0_4 = arith.constant 0 : index
    %c0_5 = arith.constant 0 : index
    %c0_6 = arith.constant 0 : index
    %7 = vector.load %arg12[%c0_4, %c0_5, %c0_6] : memref<2x10x60xf32, #tpu.memory_space<vmem>>, vector<2x1x60xf32>
    tpu.vector_store %arg12[%c0_4, %c0_5, %c0_6], %6 {strides = array<i32>} : memref<2x10x60xf32, #tpu.memory_space<vmem>>, vector<2x1x60xf32>,
    %c0_7 = arith.constant 0 : index
    %c9 = arith.constant 9 : index
    %c0_8 = arith.constant 0 : index
    %8 = vector.load %arg12[%c0_7, %c9, %c0_8] : memref<2x10x60xf32, #tpu.memory_space<vmem>>, vector<2x1x60xf32>
    tpu.vector_store %arg12[%c0_7, %c9, %c0_8], %6 {strides = array<i32>} : memref<2x10x60xf32, #tpu.memory_space<vmem>>, vector<2x1x60xf32>,
    %c0_9 = arith.constant 0 : index
    %c1_10 = arith.constant 1 : index
    %c0_11 = arith.constant 0 : index
    %9 = vector.load %arg12[%c0_9, %c1_10, %c0_11] : memref<2x10x60xf32, #tpu.memory_space<vmem>>, vector<2x8x60xf32>
    tpu.vector_store %arg12[%c0_9, %c1_10, %c0_11], %5 {strides = array<i32>} : memref<2x10x60xf32, #tpu.memory_space<vmem>>, vector<2x8x60xf32>,
    %cst_12 = arith.constant 0.000000e+00 : f32
    %10 = vector.broadcast %cst_12 : f32 to vector<16x64xf32>
    %c0_13 = arith.constant 0 : index
    %c0_14 = arith.constant 0 : index
    %c0_15 = arith.constant 0 : index
    %11 = vector.load %arg12[%c0_13, %c0_14, %c0_15] : memref<2x10x60xf32, #tpu.memory_space<vmem>>, vector<2x8x60xf32>
    %12 = vector.shape_cast %11 : vector<2x8x60xf32> to vector<16x60xf32>
    %c0_16 = arith.constant 0 : index
    %c0_17 = arith.constant 0 : index
    %c0_18 = arith.constant 0 : index
    %13 = vector.load %arg1[%c0_16, %c0_17, %c0_18] : memref<3x60x64xf32, #tpu.memory_space<vmem>>, vector<1x60x64xf32>
    %14 = vector.shape_cast %13 : vector<1x60x64xf32> to vector<60x64xf32>
    %cst_19 = arith.constant dense<0.000000e+00> : vector<16x64xf32>
    %15 = tpu.matmul %12, %14, %cst_19 {dimension_numbers = #tpu.dot_dimension_numbers<[1], [0], [0], [1], [0, 0, 1, 1], [], []>} : vector<16x60xf32>, vector<60x64xf32>, vector<16x64xf32> -> vector<16x64xf32>
    %16 = arith.addf %10, %15 : vector<16x64xf32>
    %c0_20 = arith.constant 0 : index
    %c1_21 = arith.constant 1 : index
    %c0_22 = arith.constant 0 : index
    %17 = vector.load %arg12[%c0_20, %c1_21, %c0_22] : memref<2x10x60xf32, #tpu.memory_space<vmem>>, vector<2x8x60xf32>
    %18 = vector.shape_cast %17 : vector<2x8x60xf32> to vector<16x60xf32>
    %c1_23 = arith.constant 1 : index
    %c0_24 = arith.constant 0 : index
    %c0_25 = arith.constant 0 : index
    %19 = vector.load %arg1[%c1_23, %c0_24, %c0_25] : memref<3x60x64xf32, #tpu.memory_space<vmem>>, vector<1x60x64xf32>
    %20 = vector.shape_cast %19 : vector<1x60x64xf32> to vector<60x64xf32>
    %cst_26 = arith.constant dense<0.000000e+00> : vector<16x64xf32>
    %21 = tpu.matmul %18, %20, %cst_26 {dimension_numbers = #tpu.dot_dimension_numbers<[1], [0], [0], [1], [0, 0, 1, 1], [], []>} : vector<16x60xf32>, vector<60x64xf32>, vector<16x64xf32> -> vector<16x64xf32>
    %22 = arith.addf %16, %21 : vector<16x64xf32>
    %c0_27 = arith.constant 0 : index
    %c2 = arith.constant 2 : index
    %c0_28 = arith.constant 0 : index
    %23 = vector.load %arg12[%c0_27, %c2, %c0_28] : memref<2x10x60xf32, #tpu.memory_space<vmem>>, vector<2x8x60xf32>
    %24 = vector.shape_cast %23 : vector<2x8x60xf32> to vector<16x60xf32>
    %c2_29 = arith.constant 2 : index
    %c0_30 = arith.constant 0 : index
    %c0_31 = arith.constant 0 : index
    %25 = vector.load %arg1[%c2_29, %c0_30, %c0_31] : memref<3x60x64xf32, #tpu.memory_space<vmem>>, vector<1x60x64xf32>
    %26 = vector.shape_cast %25 : vector<1x60x64xf32> to vector<60x64xf32>
    %cst_32 = arith.constant dense<0.000000e+00> : vector<16x64xf32>
    %27 = tpu.matmul %24, %26, %cst_32 {dimension_numbers = #tpu.dot_dimension_numbers<[1], [0], [0], [1], [0, 0, 1, 1], [], []>} : vector<16x60xf32>, vector<60x64xf32>, vector<16x64xf32> -> vector<16x64xf32>
    %28 = arith.addf %22, %27 : vector<16x64xf32>
    %cst_33 = arith.constant dense<0.000000e+00> : vector<64xf32>
    %29 = vector.multi_reduction <add>, %28, %cst_33 [0] : vector<16x64xf32> to vector<64xf32>
    %30 = vector.shape_cast %29 : vector<64xf32> to vector<1x64xf32>
    %31 = arith.mulf %28, %28 : vector<16x64xf32>
    %cst_34 = arith.constant dense<0.000000e+00> : vector<64xf32>
    %32 = vector.multi_reduction <add>, %31, %cst_34 [0] : vector<16x64xf32> to vector<64xf32>
    %33 = vector.shape_cast %32 : vector<64xf32> to vector<1x64xf32>
    %c0_35 = arith.constant 0 : index
    %c0_36 = arith.constant 0 : index
    %34 = vector.load %arg2[%c0_35, %c0_36] : memref<64x8xf32, #tpu.memory_space<vmem>>, vector<64x8xf32>
    %cst_37 = arith.constant dense<0.000000e+00> : vector<1x8xf32>
    %35 = tpu.matmul %30, %34, %cst_37 {dimension_numbers = #tpu.dot_dimension_numbers<[1], [0], [0], [1], [0, 0, 1, 1], [], []>} : vector<1x64xf32>, vector<64x8xf32>, vector<1x8xf32> -> vector<1x8xf32>
    %cst_38 = arith.constant 1.280000e+02 : f32
    %36 = vector.broadcast %cst_38 : f32 to vector<1x8xf32>
    %37 = arith.divf %35, %36 : vector<1x8xf32>
    %cst_39 = arith.constant dense<0.000000e+00> : vector<1x8xf32>
    %38 = tpu.matmul %33, %34, %cst_39 {dimension_numbers = #tpu.dot_dimension_numbers<[1], [0], [0], [1], [0, 0, 1, 1], [], []>} : vector<1x64xf32>, vector<64x8xf32>, vector<1x8xf32> -> vector<1x8xf32>
    %cst_40 = arith.constant 1.280000e+02 : f32
    %39 = vector.broadcast %cst_40 : f32 to vector<1x8xf32>
    %40 = arith.divf %38, %39 : vector<1x8xf32>
    %41 = arith.mulf %37, %37 : vector<1x8xf32>
    %42 = arith.subf %40, %41 : vector<1x8xf32>
    %c0_41 = arith.constant 0 : index
    %c0_42 = arith.constant 0 : index
    %43 = vector.load %arg4[%c0_41, %c0_42] : memref<1x8xf32, #tpu.memory_space<vmem>>, vector<1x8xf32>
    %cst_43 = arith.constant 9.99999974E-6 : f32
    %44 = vector.broadcast %cst_43 : f32 to vector<1x8xf32>
    %45 = arith.addf %42, %44 : vector<1x8xf32>
    %46 = math.rsqrt %45 : vector<1x8xf32>
    %47 = arith.mulf %43, %46 : vector<1x8xf32>
    %c0_44 = arith.constant 0 : index
    %c0_45 = arith.constant 0 : index
    %48 = vector.load %arg5[%c0_44, %c0_45] : memref<1x8xf32, #tpu.memory_space<vmem>>, vector<1x8xf32>
    %49 = arith.mulf %37, %47 : vector<1x8xf32>
    %50 = arith.subf %48, %49 : vector<1x8xf32>
    %c0_46 = arith.constant 0 : index
    %c0_47 = arith.constant 0 : index
    %51 = vector.load %arg3[%c0_46, %c0_47] : memref<8x64xf32, #tpu.memory_space<vmem>>, vector<8x64xf32>
    %cst_48 = arith.constant dense<0.000000e+00> : vector<1x64xf32>
    %52 = tpu.matmul %47, %51, %cst_48 {dimension_numbers = #tpu.dot_dimension_numbers<[1], [0], [0], [1], [0, 0, 1, 1], [], []>} : vector<1x8xf32>, vector<8x64xf32>, vector<1x64xf32> -> vector<1x64xf32>
    %cst_49 = arith.constant dense<0.000000e+00> : vector<1x64xf32>
    %53 = tpu.matmul %50, %51, %cst_49 {dimension_numbers = #tpu.dot_dimension_numbers<[1], [0], [0], [1], [0, 0, 1, 1], [], []>} : vector<1x8xf32>, vector<8x64xf32>, vector<1x64xf32> -> vector<1x64xf32>
    %54 = vector.broadcast %52 : vector<1x64xf32> to vector<16x64xf32>
    %55 = arith.mulf %28, %54 : vector<16x64xf32>
    %56 = vector.broadcast %53 : vector<1x64xf32> to vector<16x64xf32>
    %57 = arith.addf %55, %56 : vector<16x64xf32>
    %cst_50 = arith.constant 0.000000e+00 : f32
    %58 = vector.broadcast %cst_50 : f32 to vector<16x64xf32>
    %59 = arith.maximumf %57, %58 : vector<16x64xf32>
    %cst_51 = arith.constant 0.000000e+00 : f32
    %60 = vector.broadcast %cst_51 : f32 to vector<2x1x64xf32>
    %c0_52 = arith.constant 0 : index
    %c0_53 = arith.constant 0 : index
    %c0_54 = arith.constant 0 : index
    %61 = vector.load %arg13[%c0_52, %c0_53, %c0_54] : memref<2x10x64xf32, #tpu.memory_space<vmem>>, vector<2x1x64xf32>
    tpu.vector_store %arg13[%c0_52, %c0_53, %c0_54], %60 {strides = array<i32>} : memref<2x10x64xf32, #tpu.memory_space<vmem>>, vector<2x1x64xf32>,
    %c0_55 = arith.constant 0 : index
    %c9_56 = arith.constant 9 : index
    %c0_57 = arith.constant 0 : index
    %62 = vector.load %arg13[%c0_55, %c9_56, %c0_57] : memref<2x10x64xf32, #tpu.memory_space<vmem>>, vector<2x1x64xf32>
    tpu.vector_store %arg13[%c0_55, %c9_56, %c0_57], %60 {strides = array<i32>} : memref<2x10x64xf32, #tpu.memory_space<vmem>>, vector<2x1x64xf32>,
    %63 = vector.shape_cast %59 : vector<16x64xf32> to vector<2x8x64xf32>
    %c0_58 = arith.constant 0 : index
    %c1_59 = arith.constant 1 : index
    %c0_60 = arith.constant 0 : index
    %64 = vector.load %arg13[%c0_58, %c1_59, %c0_60] : memref<2x10x64xf32, #tpu.memory_space<vmem>>, vector<2x8x64xf32>
    tpu.vector_store %arg13[%c0_58, %c1_59, %c0_60], %63 {strides = array<i32>} : memref<2x10x64xf32, #tpu.memory_space<vmem>>, vector<2x8x64xf32>,
    %cst_61 = arith.constant 0.000000e+00 : f32
    %65 = vector.broadcast %cst_61 : f32 to vector<16x64xf32>
    %c0_62 = arith.constant 0 : index
    %c0_63 = arith.constant 0 : index
    %c0_64 = arith.constant 0 : index
    %66 = vector.load %arg13[%c0_62, %c0_63, %c0_64] : memref<2x10x64xf32, #tpu.memory_space<vmem>>, vector<2x8x64xf32>
    %67 = vector.shape_cast %66 : vector<2x8x64xf32> to vector<16x64xf32>
    %c0_65 = arith.constant 0 : index
    %c0_66 = arith.constant 0 : index
    %c0_67 = arith.constant 0 : index
    %68 = vector.load %arg6[%c0_65, %c0_66, %c0_67] : memref<3x64x64xf32, #tpu.memory_space<vmem>>, vector<1x64x64xf32>
    %69 = vector.shape_cast %68 : vector<1x64x64xf32> to vector<64x64xf32>
    %cst_68 = arith.constant dense<0.000000e+00> : vector<16x64xf32>
    %70 = tpu.matmul %67, %69, %cst_68 {dimension_numbers = #tpu.dot_dimension_numbers<[1], [0], [0], [1], [0, 0, 1, 1], [], []>} : vector<16x64xf32>, vector<64x64xf32>, vector<16x64xf32> -> vector<16x64xf32>
    %71 = arith.addf %65, %70 : vector<16x64xf32>
    %c0_69 = arith.constant 0 : index
    %c1_70 = arith.constant 1 : index
    %c0_71 = arith.constant 0 : index
    %72 = vector.load %arg13[%c0_69, %c1_70, %c0_71] : memref<2x10x64xf32, #tpu.memory_space<vmem>>, vector<2x8x64xf32>
    %73 = vector.shape_cast %72 : vector<2x8x64xf32> to vector<16x64xf32>
    %c1_72 = arith.constant 1 : index
    %c0_73 = arith.constant 0 : index
    %c0_74 = arith.constant 0 : index
    %74 = vector.load %arg6[%c1_72, %c0_73, %c0_74] : memref<3x64x64xf32, #tpu.memory_space<vmem>>, vector<1x64x64xf32>
    %75 = vector.shape_cast %74 : vector<1x64x64xf32> to vector<64x64xf32>
    %cst_75 = arith.constant dense<0.000000e+00> : vector<16x64xf32>
    %76 = tpu.matmul %73, %75, %cst_75 {dimension_numbers = #tpu.dot_dimension_numbers<[1], [0], [0], [1], [0, 0, 1, 1], [], []>} : vector<16x64xf32>, vector<64x64xf32>, vector<16x64xf32> -> vector<16x64xf32>
    %77 = arith.addf %71, %76 : vector<16x64xf32>
    %c0_76 = arith.constant 0 : index
    %c2_77 = arith.constant 2 : index
    %c0_78 = arith.constant 0 : index
    %78 = vector.load %arg13[%c0_76, %c2_77, %c0_78] : memref<2x10x64xf32, #tpu.memory_space<vmem>>, vector<2x8x64xf32>
    %79 = vector.shape_cast %78 : vector<2x8x64xf32> to vector<16x64xf32>
    %c2_79 = arith.constant 2 : index
    %c0_80 = arith.constant 0 : index
    %c0_81 = arith.constant 0 : index
    %80 = vector.load %arg6[%c2_79, %c0_80, %c0_81] : memref<3x64x64xf32, #tpu.memory_space<vmem>>, vector<1x64x64xf32>
    %81 = vector.shape_cast %80 : vector<1x64x64xf32> to vector<64x64xf32>
    %cst_82 = arith.constant dense<0.000000e+00> : vector<16x64xf32>
    %82 = tpu.matmul %79, %81, %cst_82 {dimension_numbers = #tpu.dot_dimension_numbers<[1], [0], [0], [1], [0, 0, 1, 1], [], []>} : vector<16x64xf32>, vector<64x64xf32>, vector<16x64xf32> -> vector<16x64xf32>
    %83 = arith.addf %77, %82 : vector<16x64xf32>
    %cst_83 = arith.constant dense<0.000000e+00> : vector<64xf32>
    %84 = vector.multi_reduction <add>, %83, %cst_83 [0] : vector<16x64xf32> to vector<64xf32>
    %85 = vector.shape_cast %84 : vector<64xf32> to vector<1x64xf32>
    %86 = arith.mulf %83, %83 : vector<16x64xf32>
    %cst_84 = arith.constant dense<0.000000e+00> : vector<64xf32>
    %87 = vector.multi_reduction <add>, %86, %cst_84 [0] : vector<16x64xf32> to vector<64xf32>
    %88 = vector.shape_cast %87 : vector<64xf32> to vector<1x64xf32>
    %c0_85 = arith.constant 0 : index
    %c0_86 = arith.constant 0 : index
    %89 = vector.load %arg7[%c0_85, %c0_86] : memref<64x8xf32, #tpu.memory_space<vmem>>, vector<64x8xf32>
    %cst_87 = arith.constant dense<0.000000e+00> : vector<1x8xf32>
    %90 = tpu.matmul %85, %89, %cst_87 {dimension_numbers = #tpu.dot_dimension_numbers<[1], [0], [0], [1], [0, 0, 1, 1], [], []>} : vector<1x64xf32>, vector<64x8xf32>, vector<1x8xf32> -> vector<1x8xf32>
    %cst_88 = arith.constant 1.280000e+02 : f32
    %91 = vector.broadcast %cst_88 : f32 to vector<1x8xf32>
    %92 = arith.divf %90, %91 : vector<1x8xf32>
    %cst_89 = arith.constant dense<0.000000e+00> : vector<1x8xf32>
    %93 = tpu.matmul %88, %89, %cst_89 {dimension_numbers = #tpu.dot_dimension_numbers<[1], [0], [0], [1], [0, 0, 1, 1], [], []>} : vector<1x64xf32>, vector<64x8xf32>, vector<1x8xf32> -> vector<1x8xf32>
    %cst_90 = arith.constant 1.280000e+02 : f32
    %94 = vector.broadcast %cst_90 : f32 to vector<1x8xf32>
    %95 = arith.divf %93, %94 : vector<1x8xf32>
    %96 = arith.mulf %92, %92 : vector<1x8xf32>
    %97 = arith.subf %95, %96 : vector<1x8xf32>
    %c0_91 = arith.constant 0 : index
    %c0_92 = arith.constant 0 : index
    %98 = vector.load %arg9[%c0_91, %c0_92] : memref<1x8xf32, #tpu.memory_space<vmem>>, vector<1x8xf32>
    %cst_93 = arith.constant 9.99999974E-6 : f32
    %99 = vector.broadcast %cst_93 : f32 to vector<1x8xf32>
    %100 = arith.addf %97, %99 : vector<1x8xf32>
    %101 = math.rsqrt %100 : vector<1x8xf32>
    %102 = arith.mulf %98, %101 : vector<1x8xf32>
    %c0_94 = arith.constant 0 : index
    %c0_95 = arith.constant 0 : index
    %103 = vector.load %arg10[%c0_94, %c0_95] : memref<1x8xf32, #tpu.memory_space<vmem>>, vector<1x8xf32>
    %104 = arith.mulf %92, %102 : vector<1x8xf32>
    %105 = arith.subf %103, %104 : vector<1x8xf32>
    %c0_96 = arith.constant 0 : index
    %c0_97 = arith.constant 0 : index
    %106 = vector.load %arg8[%c0_96, %c0_97] : memref<8x64xf32, #tpu.memory_space<vmem>>, vector<8x64xf32>
    %cst_98 = arith.constant dense<0.000000e+00> : vector<1x64xf32>
    %107 = tpu.matmul %102, %106, %cst_98 {dimension_numbers = #tpu.dot_dimension_numbers<[1], [0], [0], [1], [0, 0, 1, 1], [], []>} : vector<1x8xf32>, vector<8x64xf32>, vector<1x64xf32> -> vector<1x64xf32>
    %cst_99 = arith.constant dense<0.000000e+00> : vector<1x64xf32>
    %108 = tpu.matmul %105, %106, %cst_99 {dimension_numbers = #tpu.dot_dimension_numbers<[1], [0], [0], [1], [0, 0, 1, 1], [], []>} : vector<1x8xf32>, vector<8x64xf32>, vector<1x64xf32> -> vector<1x64xf32>
    %109 = vector.broadcast %107 : vector<1x64xf32> to vector<16x64xf32>
    %110 = arith.mulf %83, %109 : vector<16x64xf32>
    %111 = vector.broadcast %108 : vector<1x64xf32> to vector<16x64xf32>
    %112 = arith.addf %110, %111 : vector<16x64xf32>
    %cst_100 = arith.constant 0.000000e+00 : f32
    %113 = vector.broadcast %cst_100 : f32 to vector<16x64xf32>
    %114 = arith.maximumf %112, %113 : vector<16x64xf32>
    %c0_101 = arith.constant 0 : index
    %c0_102 = arith.constant 0 : index
    %115 = vector.load %arg11[%c0_101, %c0_102] : memref<16x64xf32, #tpu.memory_space<vmem>>, vector<16x64xf32>
    tpu.vector_store %arg11[%c0_101, %c0_102], %114 {strides = array<i32>} : memref<16x64xf32, #tpu.memory_space<vmem>>, vector<16x64xf32>,
    return
  }
}

</mosaic_0001>

<bundles_post_ra>
// kernel: tpu_custom_call.1
= control target key start
LH: loop header
LB: loop body
LE: loop exit
PB: predicated region body
PF: predicated region fallthrough
CT: control target
= control target key end

     0   :  { %16 = vsyncpa [#allocation5], 0  ;;  %s2269_s0 = inlined_call_operand.vmem [shape: f32[2,16,64], index: 0, kind: input, shape index: {}]   ;;  %s2270_s1 = inlined_call_operand.hbm [shape: f32[3,60,64], index: 1, kind: input, shape index: {}]   ;;  %s2271_s2 = inlined_call_operand.vmem [shape: f32[64,8], index: 2, kind: input, shape index: {}]   ;;  %s2272_s3 = inlined_call_operand.vmem [shape: f32[8,64], index: 3, kind: input, shape index: {}]   ;;  %s2273_s4 = inlined_call_operand.vmem [shape: f32[1,8], index: 4, kind: input, shape index: {}]   ;;  %s2274_s5 = inlined_call_operand.vmem [shape: f32[1,8], index: 5, kind: input, shape index: {}]   ;;  %s2275_s6 = inlined_call_operand.hbm [shape: f32[3,64,64], index: 6, kind: input, shape index: {}]   ;;  %s2276_s7 = inlined_call_operand.vmem [shape: f32[64,8], index: 7, kind: input, shape index: {}]   ;;  %s2277_s8 = inlined_call_operand.vmem [shape: f32[8,64], index: 8, kind: input, shape index: {}]   ;;  %s2278_s9 = inlined_call_operand.vmem [shape: f32[1,8], index: 9, kind: input, shape index: {}]   ;;  %s2279_s10 = inlined_call_operand.vmem [shape: f32[1,8], index: 10, kind: input, shape index: {}]   ;;  %s2280_s11 = inlined_call_operand.hbm [shape: f32[16,64], index: 11, kind: output, shape index: {}]  }
   0x1   :  { %17 = vsyncpa [#allocation8], 0 }
   0x2   :  { %18 = vsyncpa [#allocation6], 0  ;;  %s1964_s17 = smov [#allocation4]   ;;  %s1892_s21 = scalar_lea.hbm %s2270_s1, 3072 }
   0x3   :  { %s26_s18 = sshll.u32 %s1964_s17, 4  ;;  %p1893_p0 = scmp.ne.s32.totalorder %s2270_s1, %s1892_s21  ;;  %s27_s18 = int_to_ptr.vmem [resolvable:$true] %s26_s18 }
   0x4   :  { %p1896_p1 = scmp.lt.u32.totalorder %s1892_s21, %s2270_s1 }
   0x6   :  { %p1898_p2 = pnand %p1896_p1, %p1893_p0 }
   0x8   :  { %1901 = shalt.err (!%p1898_p2)
}
   0x9   :  { %s1902_s26 = scalar_lea.vmem %s27_s18, 3072  ;;  %p1907_p4 = scmp.lt.s32.totalorder %s27_s18, %s27_s18 }
   0xa   :  { %p1903_p3 = scmp.ne.s32.totalorder %s27_s18, %s1902_s26  ;;  %p1908_p5 = scmp.lt.s32.totalorder %s1902_s26, %s1902_s26 }
   0xc   :  { %p1909_p6 = por %p1908_p5, %p1907_p4 }
   0xe   :  { %p1910_p7 = pnand %p1909_p6, %p1903_p3 }
  0x10   :  { %1913 = shalt.err (!%p1910_p7)
}
  0x11   :  { %s1965_s27 = smov 128   ;;  %s1966_s28 = smov 8  }
  0x12   :  { %32 = dma.hbm_to_vmem [thread:$0]  %s2270_s1, 3072, %s27_s18, [#allocation5], %s1965_s27, %s1965_s27, %s1966_s28  }
  0x13   :  { %s1967_s12 = smov [#allocation7]   ;;  %s1914_s16 = scalar_lea.hbm %s2275_s6, 3072 }
  0x14   :  { %s46_s13 = sshll.u32 %s1967_s12, 4  ;;  %p1915_p8 = scmp.ne.s32.totalorder %s2275_s6, %s1914_s16  ;;  %s47_s13 = int_to_ptr.vmem [resolvable:$true] %s46_s13 }
  0x15   :  { %p1918_p9 = scmp.lt.u32.totalorder %s1914_s16, %s2275_s6 }
  0x17   :  { %p1920_p10 = pnand %p1918_p9, %p1915_p8 }
  0x19   :  { %1923 = shalt.err (!%p1920_p10)
}
  0x1a   :  { %s1924_s22 = scalar_lea.vmem %s47_s13, 3072  ;;  %p1929_p12 = scmp.lt.s32.totalorder %s47_s13, %s47_s13 }
  0x1b   :  { %p1925_p11 = scmp.ne.s32.totalorder %s47_s13, %s1924_s22  ;;  %p1930_p13 = scmp.lt.s32.totalorder %s1924_s22, %s1924_s22 }
  0x1d   :  { %p1931_p0 = por %p1930_p13, %p1929_p12 }
  0x1f   :  { %p1932_p1 = pnand %p1931_p0, %p1925_p11 }
  0x21   :  { %1935 = shalt.err (!%p1932_p1)
}
  0x22   :  { %52 = dma.hbm_to_vmem [thread:$0]  %s2275_s6, 3072, %s47_s13, [#allocation8], %s1965_s27, %s1965_s27, %s1966_s28  }
  0x23   :  { %1958 = dma.done.wait [#allocation5], 3072  }
  0x24   :  { %1959 = vsyncadd [#allocation5], 4294964224 }
  0x25   :  { %1960 = dma.done.wait [#allocation8], 3072  }
  0x26   :  { %1961 = vsyncadd [#allocation8], 4294964224  ;;  %vm86_vm0 = vcmask 483328   ;;  %v1968_v0 = vmov 0.0   ;;  %v67_v1 = vld [vmem:[%s2269_s0] ss:$2 sm:$0xff] }
  0x27   :  { %87 = vst.msk [vmem:[#allocation2] sm:$0x1] %vm86_vm0, %v1968_v0  ;;  %88 = vst.msk [vmem:[#allocation2 + $0x10] sm:$0x1] %vm86_vm0, %v1968_v0  ;;  %v1381_v2 = vld [vmem:[%s2269_s0 + $0x1] ss:$2 sm:$0xff] }
  0x28   :  { %89 = vst.msk [vmem:[#allocation2 + $0x9] sm:$0x1] %vm86_vm0, %v1968_v0  ;;  %90 = vst.msk [vmem:[#allocation2 + $0x19] sm:$0x1] %vm86_vm0, %v1968_v0  ;;  %v1380_v3 = vld [vmem:[%s2269_s0 + $0x10] ss:$2 sm:$0xff]  ;;  %v74_v4 = vmax.f32 %v67_v1, %v1381_v2 }
  0x29   :  { %v1382_v5 = vld [vmem:[%s2269_s0 + $0x11] ss:$2 sm:$0xff]  ;;  %v107_v6 = vld [vmem:[#allocation4 + $0x40] sm:$0xff]  ;;  %v108_v7 = vld [vmem:[#allocation4 + $0x48] sm:$0xff]  ;;  %s1969_s13 = smov 124   ;;  %vm121_vm1 = vcmask 1043456  }
  0x2a   :  { %v1720_v8 = vpack.c.bf16 %v108_v7, %v107_v6  ;;  %v109_v9 = vld [vmem:[#allocation4 + $0x50] sm:$0xff]  ;;  %v110_v10 = vld [vmem:[#allocation4 + $0x58] sm:$0xff]  ;;  %78 = vrot.lane.b32.xlu0 %v74_v4, %s1969_s13  ;;  %v75_v11 = vmax.f32 %v1380_v3, %v1382_v5  ;;  %v111_v13 = vld [vmem:[#allocation4 + $0x60] sm:$0xff]  ;;  %vm1970_vm2 = vmmov 1   ;;  %vm91_vm4 = vcmask 490496  }
  0x2b   :  { %v1724_v12 = vpack.c.bf16 %v110_v10, %v109_v9  ;;  %v112_v14 = vld [vmem:[#allocation4 + $0x68] sm:$0xff]  ;;  %v113_v16 = vld [vmem:[#allocation4 + $0x70] sm:$0xff]  ;;  %v114_v17 = vld [vmem:[#allocation4 + $0x78] sm:$0xf]  ;;  %v1971_v57 = vmov 0.0|0.0   ;;  %vm1972_vm5 = vmmov 0  }
  0x2c   :  { %1721 = vmatprep.subr.bf16.mxu0 %v1720_v8  ;;  %v1728_v15 = vpack.c.bf16 %v112_v14, %v111_v13  ;;  %v1732_v18 = vpack.c.bf16 %v114_v17, %v113_v16  ;;  %vm2080_vm3 = vmpackc.low %vm121_vm1, %vm1970_vm2  ;;  %v96_v20 = vld [vmem:[#allocation4] sm:$0xff]  ;;  %v97_v21 = vld [vmem:[#allocation4 + $0x8] sm:$0xff]  ;;  %1774 = vmatprep.subr.bf16.mxu1 %v1971_v57  ;;  %vm381_vm6 = vcmask 523264   ;;  %vm569_vm7 = vcmask 64512  }
  0x2d   :  { %1723 = vmatpush3.bf16.msra.mxu0 %v1720_v8  ;;  %v1738_v22 = vpack.c.bf16 %v97_v21, %v96_v20  ;;  %v98_v28 = vld [vmem:[#allocation4 + $0x10] sm:$0xff]  ;;  %v99_v29 = vld [vmem:[#allocation4 + $0x18] sm:$0xff]  ;;  %v100_v32 = vld [vmem:[#allocation4 + $0x20] sm:$0xff]  ;;  %1583 = vmatprep.mubr.msk.f32.mxu1 %vm1972_vm5, %v1968_v0  ;;  %vm730_vm8 = vcmask 516096  }
  0x2e   :  { %1725 = vmatprep.subr.bf16.mxu0 %v1724_v12  ;;  %80 = vrot.lane.b32.xlu0 %v75_v11, %s1969_s13  ;;  %v1742_v30 = vpack.c.bf16 %v99_v29, %v98_v28  ;;  %v101_v33 = vld [vmem:[#allocation4 + $0x28] sm:$0xff]  ;;  %v102_v36 = vld [vmem:[#allocation4 + $0x30] sm:$0xff]  ;;  %v103_v37 = vld [vmem:[#allocation4 + $0x38] sm:$0xf]  ;;  %731 = vst.msk [vmem:[#allocation3] sm:$0x1] %vm730_vm8, %v1968_v0 }
  0x2f   :  { %v1746_v35 = vpack.c.bf16 %v101_v33, %v100_v32  ;;  %v1750_v38 = vpack.c.bf16 %v103_v37, %v102_v36  ;;  %v287_v39 = vld [vmem:[#allocation4 + $0x80] sm:$0xff]  ;;  %v288_v40 = vld [vmem:[#allocation4 + $0x88] sm:$0xff]  ;;  %v289_v42 = vld [vmem:[#allocation4 + $0x90] sm:$0xff]  ;;  %732 = vst.msk [vmem:[#allocation3 + $0x10] sm:$0x1] %vm730_vm8, %v1968_v0 }
  0x30   :  { %v1756_v41 = vpack.c.bf16 %v288_v40, %v287_v39  ;;  %v290_v43 = vld [vmem:[#allocation4 + $0x98] sm:$0xff]  ;;  %v291_v46 = vld [vmem:[#allocation4 + $0xa0] sm:$0xff]  ;;  %v292_v47 = vld [vmem:[#allocation4 + $0xa8] sm:$0xff]  ;;  %733 = vst.msk [vmem:[#allocation3 + $0x9] sm:$0x1] %vm730_vm8, %v1968_v0 }
  0x31   :  { %1727 = vmatpush3.bf16.msra.mxu0 %v1724_v12  ;;  %v1760_v44 = vpack.c.bf16 %v290_v43, %v289_v42  ;;  %v1764_v49 = vpack.c.bf16 %v292_v47, %v291_v46  ;;  %v293_v50 = vld [vmem:[#allocation4 + $0xb0] sm:$0xff]  ;;  %v294_v51 = vld [vmem:[#allocation4 + $0xb8] sm:$0xf]  ;;  %v402_v54 = vld [vmem:[%s2271_s2] sm:$0xff]  ;;  %734 = vst.msk [vmem:[#allocation3 + $0x19] sm:$0x1] %vm730_vm8, %v1968_v0 }
  0x32   :  { %1729 = vmatprep.subr.bf16.mxu0 %v1728_v15  ;;  %v1768_v52 = vpack.c.bf16 %v294_v51, %v293_v50  ;;  %v403_v55 = vld [vmem:[%s2271_s2 + $0x8] sm:$0xff]  ;;  %v404_v58 = vld [vmem:[%s2271_s2 + $0x10] sm:$0xff]  ;;  %v405_v59 = vld [vmem:[%s2271_s2 + $0x18] sm:$0xff] }
  0x33   :  { %v1775_v56 = vpack.c.bf16 %v403_v55, %v402_v54  ;;  %v1778_v60 = vpack.c.bf16 %v405_v59, %v404_v58  ;;  %v406_v61 = vld [vmem:[%s2271_s2 + $0x20] sm:$0xff]  ;;  %v407_v62 = vld [vmem:[%s2271_s2 + $0x28] sm:$0xff]  ;;  %v408_v1 = vld [vmem:[%s2271_s2 + $0x30] sm:$0xff]  ;;  %v716_v58 = vlaneseq }
  0x34   :  { %v1781_v63 = vpack.c.bf16 %v407_v62, %v406_v61  ;;  %v409_v2 = vld [vmem:[%s2271_s2 + $0x38] sm:$0xff]  ;;  %v561_v36 = vld [vmem:[%s2273_s4] sm:$0x1]  ;;  %v751_v43 = vld [vmem:[#allocation7 + $0x48] sm:$0xff] }
  0x35   :  { %1731 = vmatpush3.bf16.msra.mxu0 %v1728_v15  ;;  %1776 = vmatpush3.bf16.msra.mxu1 %v1775_v56  ;;  %v1784_v3 = vpack.c.bf16 %v409_v2, %v408_v1  ;;  %v565_v39 = vld [vmem:[%s2274_s5] sm:$0x1]  ;;  %v753_v46 = vld [vmem:[#allocation7 + $0x58] sm:$0xff]  ;;  %v756_v51 = vld [vmem:[#allocation7 + $0x70] sm:$0xff]  ;;  %v717_v59 = vshrl.u32 %v716_v58, 7 }
  0x36   :  { %1734 = vmatprep.subr.msk.bf16.mxu0 %vm2080_vm3, %v1732_v18  ;;  %1777 = vmatprep.subr.bf16.mxu1 %v1971_v57  ;;  %v750_v42 = vld [vmem:[#allocation7 + $0x40] sm:$0xff]  ;;  %v740_v55 = vld [vmem:[#allocation7 + $0x8] sm:$0xff] }
  0x37   :  { %v739_v54 = vld [vmem:[#allocation7] sm:$0xff] }
  0x39   :  { %1737 = vmatpush3.bf16.msk.msra.mxu0 %vm2080_vm3, %v1732_v18  ;;  %1779 = vmatpush3.bf16.msra.mxu1 %v1778_v60 }
  0x3a   :  { %1739 = vmatprep.subr.bf16.mxu0 %v1738_v22  ;;  %1780 = vmatprep.subr.bf16.mxu1 %v1971_v57 }
  0x3d   :  { %1782 = vmatpush3.bf16.msra.mxu1 %v1781_v63 }
  0x3e   :  { %1783 = vmatprep.subr.bf16.mxu1 %v1971_v57 }
  0x41   :  { %1785 = vmatpush3.bf16.msra.mxu1 %v1784_v3 }
  0x42   :  { %1786 = vmatprep.subr.bf16.mxu1 %v1971_v57 }
  0x9c   :  { %v79_v23 = vpop.permute.xlu0 %78 }
  0x9d   :  { %v84_v24 = vmax.f32 %v74_v4, %v79_v23 }
  0x9f   :  { %92 = vst.msk [vmem:[#allocation2 + $0x1] sm:$0xff] %vm91_vm4, %v84_v24 }
  0xa0   :  { %v81_v25 = vpop.permute.xlu0 %80 }
  0xa1   :  { %v85_v26 = vmax.f32 %v75_v11, %v81_v25 }
  0xa3   :  { %93 = vst.msk [vmem:[#allocation2 + $0x11] sm:$0xff] %vm91_vm4, %v85_v26  ;;  %v568_v26 = vld [vmem:[%s2272_s3] sm:$0xff] }
  0xa6   :  { %v104_v27 = vld [vmem:[#allocation2 + $0x1] sm:$0xff] }
  0xa7   :  { %1526 = vmatprep.mubr.msk.f32.mxu0 %vm91_vm4, %v104_v27  ;;  %v94_v34 = vld [vmem:[#allocation2] sm:$0xff] }
  0xa8   :  { %v284_v48 = vld [vmem:[#allocation2 + $0x2] sm:$0xff] }
  0xaa   :  { %v105_v31 = vld [vmem:[#allocation2 + $0x11] sm:$0xff] }
  0xab   :  { %1527 = vmatmul.mubr.msk.f32.vlgmr.msra.gmra.mrb[0].mxu0 %vm91_vm4, %v105_v31  ;;  %v95_v45 = vld [vmem:[#allocation2 + $0x10] sm:$0xff] }
  0xac   :  { %1741 = vmatpush3.bf16.msra.mxu0 %v1738_v22  ;;  %1545 = vmatprep.mubr.msk.f32.mxu0 %vm91_vm4, %v94_v34  ;;  %v285_v53 = vld [vmem:[#allocation2 + $0x12] sm:$0xff] }
  0xad   :  { %1743 = vmatprep.subr.bf16.mxu0 %v1742_v30 }
  0xb0   :  { %1745 = vmatpush3.bf16.msra.mxu0 %v1742_v30 }
  0xb1   :  { %1747 = vmatprep.subr.bf16.mxu0 %v1746_v35 }
  0xb4   :  { %1749 = vmatpush3.bf16.msra.mxu0 %v1746_v35 }
  0xb5   :  { %1752 = vmatprep.subr.msk.bf16.mxu0 %vm2080_vm3, %v1750_v38 }
  0xb8   :  { %1755 = vmatpush3.bf16.msk.msra.mxu0 %vm2080_vm3, %v1750_v38 }
  0xb9   :  { %1757 = vmatprep.subr.bf16.mxu0 %v1756_v41 }
  0xbb   :  { %1546 = vmatmul.mubr.msk.f32.vlgmr.msra.gmra.mrb[0].mxu0 %vm91_vm4, %v95_v45  ;;  %v752_v45 = vld [vmem:[#allocation7 + $0x50] sm:$0xff] }
  0xbc   :  { %1759 = vmatpush3.bf16.msra.mxu0 %v1756_v41  ;;  %1564 = vmatprep.mubr.msk.f32.mxu0 %vm91_vm4, %v284_v48  ;;  %v1802_v47 = vpack.c.bf16 %v753_v46, %v752_v45  ;;  %v754_v48 = vld [vmem:[#allocation7 + $0x60] sm:$0xff]  ;;  %v1040_v46 = vld [vmem:[%s2276_s7 + $0x30] sm:$0xff] }
  0xbd   :  { %1761 = vmatprep.subr.bf16.mxu0 %v1760_v44 }
  0xc0   :  { %1763 = vmatpush3.bf16.msra.mxu0 %v1760_v44  ;;  %v1798_v44 = vpack.c.bf16 %v751_v43, %v750_v42  ;;  %v1038_v43 = vld [vmem:[%s2276_s7 + $0x20] sm:$0xff] }
  0xc1   :  { %1765 = vmatprep.subr.bf16.mxu0 %v1764_v49 }
  0xc4   :  { %1767 = vmatpush3.bf16.msra.mxu0 %v1764_v49  ;;  %v755_v49 = vld [vmem:[#allocation7 + $0x68] sm:$0xff] }
  0xc5   :  { %1770 = vmatprep.subr.msk.bf16.mxu0 %vm2080_vm3, %v1768_v52  ;;  %v1806_v50 = vpack.c.bf16 %v755_v49, %v754_v48 }
  0xc8   :  { %1773 = vmatpush3.bf16.msk.msra.mxu0 %vm2080_vm3, %v1768_v52  ;;  %v757_v52 = vld [vmem:[#allocation7 + $0x78] sm:$0xff] }
  0xc9   :  { %1846 = vmatprep.subr.bf16.mxu0 %v1971_v57 }
  0xcb   :  { %1565 = vmatmul.mubr.msk.f32.vlgmr.msra.gmra.mrb[0].mxu0 %vm91_vm4, %v285_v53  ;;  %v1810_v53 = vpack.c.bf16 %v757_v52, %v756_v51 }
  0xcc   :  { %1688 = vmatprep.mubr.msk.f32.mxu0 %vm1972_vm5, %v1968_v0 }
 0x19e   :  { %v2138_v4 = vpop.f32.mrb[0].mxu0 }
 0x19f   :  { %v383_v5 = vsel %vm381_vm6, %v2138_v4, 0.0  ;;  %v392_v6 = vmul.f32 %v2138_v4, %v2138_v4  ;;  %v2144_v7 = vpop.f32.mrb[1].mxu0 }
 0x1a0   :  { %v382_v8 = vsel %vm381_vm6, %v2144_v7, 0.0  ;;  %v391_v9 = vmul.f32 %v2144_v7, %v2144_v7 }
 0x1a1   :  { %v394_v10 = vsel %vm381_vm6, %v392_v6, 0.0  ;;  %v384_v11 = vadd.f32 %v383_v5, %v382_v8 }
 0x1a2   :  { %v393_v12 = vsel %vm381_vm6, %v391_v9, 0.0 }
 0x1a3   :  { %v385_v13 = vrot.slane %v384_v11, 4  ;;  %v395_v14 = vadd.f32 %v394_v10, %v393_v12  ;;  %v741_v12 = vld [vmem:[#allocation7 + $0x10] sm:$0xff] }
 0x1a5   :  { %v386_v15 = vadd.f32 %v385_v13, %v384_v11  ;;  %v396_v18 = vrot.slane %v395_v14, 4  ;;  %v742_v13 = vld [vmem:[#allocation7 + $0x18] sm:$0xff] }
 0x1a7   :  { %v387_v16 = vrot.slane %v386_v15, 2  ;;  %v397_v20 = vadd.f32 %v396_v18, %v395_v14 }
 0x1a9   :  { %v388_v17 = vadd.f32 %v387_v16, %v386_v15  ;;  %v398_v22 = vrot.slane %v397_v20, 2  ;;  %v1818_v16 = vpack.c.bf16 %v742_v13, %v741_v12  ;;  %v1199_v12 = vld [vmem:[%s2277_s8] sm:$0xff] }
 0x1ab   :  { %v389_v19 = vrot.slane %v388_v17, 1  ;;  %v399_v23 = vadd.f32 %v398_v22, %v397_v20  ;;  %v746_v20 = vld [vmem:[#allocation7 + $0x38] sm:$0xff]  ;;  %v923_v22 = vld [vmem:[#allocation7 + $0x80] sm:$0xff] }
 0x1ad   :  { %v390_v21 = vadd.f32 %v389_v19, %v388_v17  ;;  %v400_v24 = vrot.slane %v399_v23, 1  ;;  %v745_v19 = vld [vmem:[#allocation7 + $0x30] sm:$0xff] }
 0x1af   :  { %1584 = vmatmul.mubr.msk.f32.vlgmr.msra.gmra.mrb[0].mxu1 %vm381_vm6, %v390_v21  ;;  %v401_v25 = vadd.f32 %v400_v24, %v399_v23  ;;  %v1826_v21 = vpack.c.bf16 %v746_v20, %v745_v19  ;;  %v924_v23 = vld [vmem:[#allocation7 + $0x88] sm:$0xff]  ;;  %v1192_v19 = vld [vmem:[%s2278_s9] sm:$0x1]  ;;  %s1973_s9 = smov [#allocation9]  }
 0x1b0   :  { %1788 = vmatpush3.bf16.msra.mxu1 %v1775_v56  ;;  %1602 = vmatprep.mubr.msk.f32.mxu1 %vm1972_vm5, %v1968_v0  ;;  %v1814_v56 = vpack.c.bf16 %v740_v55, %v739_v54  ;;  %v1830_v24 = vpack.c.bf16 %v924_v23, %v923_v22  ;;  %v1196_v22 = vld [vmem:[%s2279_s10] sm:$0x1]  ;;  %s1367_s10 = sshll.u32 %s1973_s9, 4  ;;  %s1368_s10 = int_to_ptr.vmem [resolvable:$true] %s1367_s10 }
 0x1b1   :  { %1789 = vmatprep.subr.bf16.mxu1 %v1971_v57  ;;  %s1936_s30 = scalar_lea.vmem %s1368_s10, 256  ;;  %p1941_p3 = scmp.lt.s32.totalorder %s1368_s10, %s1368_s10 }
 0x1b2   :  { %p1937_p2 = scmp.ne.s32.totalorder %s1368_s10, %s1936_s30  ;;  %p1942_p4 = scmp.lt.s32.totalorder %s1936_s30, %s1936_s30 }
 0x1b4   :  { %1791 = vmatpush3.bf16.msra.mxu1 %v1778_v60  ;;  %v2180_v60 = vsub.s32 0, %v717_v59  ;;  %p1943_p5 = por %p1942_p4, %p1941_p3 }
 0x1b5   :  { %1792 = vmatprep.subr.bf16.mxu1 %v1971_v57 }
 0x1b6   :  { %p1944_p6 = pnand %p1943_p5, %p1937_p2 }
 0x1b8   :  { %1794 = vmatpush3.bf16.msra.mxu1 %v1781_v63 }
 0x1b9   :  { %1795 = vmatprep.subr.bf16.mxu1 %v1971_v57 }
 0x1bc   :  { %1797 = vmatpush3.bf16.msra.mxu1 %v1784_v3 }
 0x1bd   :  { %1605 = vmatprep.subr.mxu1 %v1968_v0 }
 0x1bf   :  { %1603 = vmatmul.mubr.msk.f32.vlgmr.msra.gmra.mrb[2].mxu1 %vm381_vm6, %v401_v25  ;;  %v925_v25 = vld [vmem:[#allocation7 + $0x90] sm:$0xff] }
 0x1c0   :  { %1607 = vmatprep.mubr.msk.f32.mxu1 %vm1972_vm5, %v1968_v0  ;;  %1606 = vmatpush3.msra.mxu1 %v568_v26 }
 0x1c1   :  { %1610 = vmatprep.subr.mxu1 %v1968_v0 }
 0x282   :  { %v479_v27 = vpop.f32.mrb[0].mxu1 }
 0x283   :  { %v1585_v28 = vpop.f32.mrb[1].mxu1  ;;  %v484_v29 = vmul.f32 0.0078125, %v479_v27 }
 0x285   :  { %v559_v31 = vmul.f32 %v484_v29, %v484_v29 }
 0x292   :  { %v554_v30 = vpop.f32.mrb[2].mxu1 }
 0x293   :  { %v558_v32 = vmul.f32 0.0078125, %v554_v30  ;;  %v1604_v33 = vpop.f32.mrb[3].mxu1  ;;  %v928_v30 = vld [vmem:[#allocation7 + $0xa8] sm:$0xff] }
 0x294   :  { %v929_v33 = vld [vmem:[#allocation7 + $0xb0] sm:$0xff] }
 0x295   :  { %v560_v34 = vsub.f32 %v558_v32, %v559_v31 }
 0x297   :  { %v562_v35 = vadd.f32 1e-05, %v560_v34  ;;  %v930_v34 = vld [vmem:[#allocation7 + $0xb8] sm:$0xff] }
 0x299   :  { %1888 = vrsqrt.f32 %v562_v35  ;;  %v1842_v35 = vpack.c.bf16 %v930_v34, %v929_v33 }
 0x2a3   :  { %v1889_v37 = vpop.eup %1888 }
 0x2a4   :  { %v564_v38 = vmul.f32 %v1889_v37, %v561_v36  ;;  %v1034_v37 = vld [vmem:[%s2276_s7] sm:$0xff] }
 0x2a6   :  { %1608 = vmatmul.mubr.msk.f32.vlgmr.msra.gmra.mrb[4].mxu1 %vm569_vm7, %v564_v38  ;;  %v566_v40 = vmul.f32 %v564_v38, %v484_v29  ;;  %v927_v29 = vld [vmem:[#allocation7 + $0xa0] sm:$0xff]  ;;  %v1035_v38 = vld [vmem:[%s2276_s7 + $0x8] sm:$0xff] }
 0x2a7   :  { %1611 = vmatpush3.msra.mxu1 %v568_v26  ;;  %1612 = vmatprep.mubr.msk.f32.mxu1 %vm1972_vm5, %v1968_v0  ;;  %v926_v26 = vld [vmem:[#allocation7 + $0x98] sm:$0xff]  ;;  %v1838_v32 = vpack.c.bf16 %v928_v30, %v927_v29 }
 0x2a8   :  { %v567_v41 = vsub.f32 %v565_v39, %v566_v40  ;;  %1799 = vmatprep.subr.bf16.mxu1 %v1798_v44  ;;  %v1834_v27 = vpack.c.bf16 %v926_v26, %v925_v25  ;;  %v1847_v39 = vpack.c.bf16 %v1035_v38, %v1034_v37  ;;  %v1036_v40 = vld [vmem:[%s2276_s7 + $0x10] sm:$0xff] }
 0x2aa   :  { %1613 = vmatmul.mubr.msk.f32.vlgmr.msra.gmra.mrb[6].mxu1 %vm569_vm7, %v567_v41  ;;  %1848 = vmatpush3.bf16.msra.mxu0 %v1847_v39  ;;  %v1037_v41 = vld [vmem:[%s2276_s7 + $0x18] sm:$0xff] }
 0x2ab   :  { %1801 = vmatpush3.bf16.msra.mxu1 %v1798_v44  ;;  %1849 = vmatprep.subr.bf16.mxu0 %v1971_v57  ;;  %v1850_v42 = vpack.c.bf16 %v1037_v41, %v1036_v40  ;;  %v1039_v44 = vld [vmem:[%s2276_s7 + $0x28] sm:$0xff] }
 0x2ac   :  { %1803 = vmatprep.subr.bf16.mxu1 %v1802_v47  ;;  %v1853_v45 = vpack.c.bf16 %v1039_v44, %v1038_v43 }
 0x2ae   :  { %1851 = vmatpush3.bf16.msra.mxu0 %v1850_v42 }
 0x2af   :  { %1805 = vmatpush3.bf16.msra.mxu1 %v1802_v47  ;;  %1852 = vmatprep.subr.bf16.mxu0 %v1971_v57  ;;  %v1041_v47 = vld [vmem:[%s2276_s7 + $0x38] sm:$0xff] }
 0x2b0   :  { %1807 = vmatprep.subr.bf16.mxu1 %v1806_v50  ;;  %v1856_v48 = vpack.c.bf16 %v1041_v47, %v1040_v46 }
 0x2b2   :  { %1854 = vmatpush3.bf16.msra.mxu0 %v1853_v45 }
 0x2b3   :  { %1809 = vmatpush3.bf16.msra.mxu1 %v1806_v50  ;;  %1855 = vmatprep.subr.bf16.mxu0 %v1971_v57 }
 0x2b4   :  { %1811 = vmatprep.subr.bf16.mxu1 %v1810_v53 }
 0x2b6   :  { %1857 = vmatpush3.bf16.msra.mxu0 %v1856_v48 }
 0x2b7   :  { %1813 = vmatpush3.bf16.msra.mxu1 %v1810_v53  ;;  %1858 = vmatprep.subr.bf16.mxu0 %v1971_v57 }
 0x2b8   :  { %1815 = vmatprep.subr.bf16.mxu1 %v1814_v56 }
 0x379   :  { %v639_v61 = vpop.f32.mrb[4].mxu1 }
 0x37a   :  { %v719_v62 = vrot.slane %v639_v61, %v2180_v60  ;;  %v1609_v63 = vpop.f32.mrb[5].mxu1 }
 0x37c   :  { %v720_v1 = vmul.f32 %v719_v62, %v2144_v7  ;;  %v721_v2 = vmul.f32 %v2138_v4, %v719_v62  ;;  %v743_v4 = vld [vmem:[#allocation7 + $0x20] sm:$0xff]  ;;  %v744_v7 = vld [vmem:[#allocation7 + $0x28] sm:$0xff] }
 0x37d   :  { %v712_v3 = vpop.f32.mrb[6].mxu1  ;;  %v1822_v18 = vpack.c.bf16 %v744_v7, %v743_v4 }
 0x37e   :  { %v725_v5 = vrot.slane %v712_v3, %v2180_v60  ;;  %v1614_v6 = vpop.f32.mrb[7].mxu1 }
 0x380   :  { %v726_v8 = vadd.f32 %v725_v5, %v720_v1  ;;  %v727_v9 = vadd.f32 %v725_v5, %v721_v2 }
 0x382   :  { %v728_v10 = vmax.f32 %v726_v8, 0.0  ;;  %v729_v11 = vmax.f32 %v727_v9, 0.0 }
 0x384   :  { %735 = vst.msk [vmem:[#allocation3 + $0x1] sm:$0xff] %vm381_vm6, %v728_v10  ;;  %736 = vst.msk [vmem:[#allocation3 + $0x11] sm:$0xff] %vm381_vm6, %v729_v11 }
 0x38b   :  { %v747_v14 = vld [vmem:[#allocation3 + $0x1] sm:$0xff]  ;;  %v748_v15 = vld [vmem:[#allocation3 + $0x11] sm:$0xff] }
 0x38c   :  { %1631 = vmatprep.mubr.msk.f32.mxu1 %vm381_vm6, %v747_v14  ;;  %v737_v17 = vld [vmem:[#allocation3] sm:$0xff]  ;;  %v738_v28 = vld [vmem:[#allocation3 + $0x10] sm:$0xff] }
 0x38d   :  { %1632 = vmatmul.mubr.msk.f32.vlgmr.msra.gmra.mrb[8].mxu1 %vm381_vm6, %v748_v15  ;;  %v920_v31 = vld [vmem:[#allocation3 + $0x2] sm:$0xff]  ;;  %v921_v36 = vld [vmem:[#allocation3 + $0x12] sm:$0xff] }
 0x38e   :  { %1817 = vmatpush3.bf16.msra.mxu1 %v1814_v56  ;;  %1650 = vmatprep.mubr.msk.f32.mxu1 %vm381_vm6, %v737_v17 }
 0x38f   :  { %1819 = vmatprep.subr.bf16.mxu1 %v1818_v16 }
 0x392   :  { %1821 = vmatpush3.bf16.msra.mxu1 %v1818_v16 }
 0x393   :  { %1823 = vmatprep.subr.bf16.mxu1 %v1822_v18 }
 0x396   :  { %1825 = vmatpush3.bf16.msra.mxu1 %v1822_v18 }
 0x397   :  { %1827 = vmatprep.subr.bf16.mxu1 %v1826_v21 }
 0x39a   :  { %1829 = vmatpush3.bf16.msra.mxu1 %v1826_v21 }
 0x39b   :  { %1831 = vmatprep.subr.bf16.mxu1 %v1830_v24 }
 0x39d   :  { %1651 = vmatmul.mubr.msk.f32.vlgmr.msra.gmra.mrb[8].mxu1 %vm381_vm6, %v738_v28 }
 0x39e   :  { %1833 = vmatpush3.bf16.msra.mxu1 %v1830_v24  ;;  %1669 = vmatprep.mubr.msk.f32.mxu1 %vm381_vm6, %v920_v31 }
 0x39f   :  { %1835 = vmatprep.subr.bf16.mxu1 %v1834_v27 }
 0x3a2   :  { %1837 = vmatpush3.bf16.msra.mxu1 %v1834_v27 }
 0x3a3   :  { %1839 = vmatprep.subr.bf16.mxu1 %v1838_v32 }
 0x3a6   :  { %1841 = vmatpush3.bf16.msra.mxu1 %v1838_v32 }
 0x3a7   :  { %1843 = vmatprep.subr.bf16.mxu1 %v1842_v35 }
 0x3aa   :  { %1845 = vmatpush3.bf16.msra.mxu1 %v1842_v35 }
 0x3ad   :  { %1670 = vmatmul.mubr.msk.f32.vlgmr.msra.gmra.mrb[8].mxu1 %vm381_vm6, %v921_v36 }
 0x480   :  { %v1671_v49 = vpop.f32.mrb[8].mxu1 }
 0x481   :  { %v1015_v50 = vsel %vm381_vm6, %v1671_v49, 0.0  ;;  %v1024_v51 = vmul.f32 %v1671_v49, %v1671_v49  ;;  %v1003_v52 = vpop.f32.mrb[9].mxu1 }
 0x482   :  { %v1014_v53 = vsel %vm381_vm6, %v1003_v52, 0.0  ;;  %v1023_v54 = vmul.f32 %v1003_v52, %v1003_v52 }
 0x483   :  { %v1026_v55 = vsel %vm381_vm6, %v1024_v51, 0.0  ;;  %v1016_v56 = vadd.f32 %v1015_v50, %v1014_v53 }
 0x484   :  { %v1025_v58 = vsel %vm381_vm6, %v1023_v54, 0.0 }
 0x485   :  { %v1017_v59 = vrot.slane %v1016_v56, 4  ;;  %v1027_v61 = vadd.f32 %v1026_v55, %v1025_v58 }
 0x487   :  { %v1018_v62 = vadd.f32 %v1017_v59, %v1016_v56  ;;  %v1028_v2 = vrot.slane %v1027_v61, 4 }
 0x489   :  { %v1019_v63 = vrot.slane %v1018_v62, 2  ;;  %v1029_v6 = vadd.f32 %v1028_v2, %v1027_v61 }
 0x48b   :  { %v1020_v1 = vadd.f32 %v1019_v63, %v1018_v62  ;;  %v1030_v8 = vrot.slane %v1029_v6, 2 }
 0x48d   :  { %v1021_v3 = vrot.slane %v1020_v1, 1  ;;  %v1031_v9 = vadd.f32 %v1030_v8, %v1029_v6 }
 0x48f   :  { %v1022_v5 = vadd.f32 %v1021_v3, %v1020_v1  ;;  %v1032_v10 = vrot.slane %v1031_v9, 1 }
 0x491   :  { %1689 = vmatmul.mubr.msk.f32.vlgmr.msra.gmra.mrb[2].mxu0 %vm381_vm6, %v1022_v5  ;;  %v1033_v11 = vadd.f32 %v1032_v10, %v1031_v9 }
 0x492   :  { %1860 = vmatpush3.bf16.msra.mxu0 %v1847_v39  ;;  %1707 = vmatprep.mubr.msk.f32.mxu0 %vm1972_vm5, %v1968_v0 }
 0x493   :  { %1861 = vmatprep.subr.bf16.mxu0 %v1971_v57 }
 0x496   :  { %1863 = vmatpush3.bf16.msra.mxu0 %v1850_v42 }
 0x497   :  { %1864 = vmatprep.subr.bf16.mxu0 %v1971_v57 }
 0x49a   :  { %1866 = vmatpush3.bf16.msra.mxu0 %v1853_v45 }
 0x49b   :  { %1867 = vmatprep.subr.bf16.mxu0 %v1971_v57 }
 0x49e   :  { %1869 = vmatpush3.bf16.msra.mxu0 %v1856_v48 }
 0x49f   :  { %1710 = vmatprep.subr.mxu0 %v1968_v0 }
 0x4a1   :  { %1708 = vmatmul.mubr.msk.f32.vlgmr.msra.gmra.mrb[4].mxu0 %vm381_vm6, %v1033_v11 }
 0x4a2   :  { %1712 = vmatprep.mubr.msk.f32.mxu0 %vm1972_vm5, %v1968_v0  ;;  %1711 = vmatpush3.msra.mxu0 %v1199_v12 }
 0x4a3   :  { %1715 = vmatprep.subr.mxu0 %v1968_v0 }
 0x564   :  { %v1111_v13 = vpop.f32.mrb[2].mxu0 }
 0x565   :  { %v1690_v14 = vpop.f32.mrb[3].mxu0  ;;  %v1115_v15 = vmul.f32 0.0078125, %v1111_v13 }
 0x567   :  { %v1190_v16 = vmul.f32 %v1115_v15, %v1115_v15 }
 0x574   :  { %v1185_v57 = vpop.f32.mrb[4].mxu0 }
 0x575   :  { %v1189_v4 = vmul.f32 0.0078125, %v1185_v57  ;;  %v1709_v7 = vpop.f32.mrb[5].mxu0 }
 0x577   :  { %v1191_v17 = vsub.f32 %v1189_v4, %v1190_v16 }
 0x579   :  { %v1193_v18 = vadd.f32 1e-05, %v1191_v17 }
 0x57b   :  { %1890 = vrsqrt.f32 %v1193_v18 }
 0x585   :  { %v1891_v20 = vpop.eup %1890 }
 0x586   :  { %v1195_v21 = vmul.f32 %v1891_v20, %v1192_v19 }
 0x588   :  { %1713 = vmatmul.mubr.msk.f32.vlgmr.msra.gmra.mrb[6].mxu0 %vm569_vm7, %v1195_v21  ;;  %v1197_v23 = vmul.f32 %v1195_v21, %v1115_v15 }
 0x589   :  { %1716 = vmatpush3.msra.mxu0 %v1199_v12  ;;  %1717 = vmatprep.mubr.msk.f32.mxu0 %vm1972_vm5, %v1968_v0 }
 0x58a   :  { %v1198_v24 = vsub.f32 %v1196_v22, %v1197_v23 }
 0x58c   :  { %1718 = vmatmul.mubr.msk.f32.vlgmr.msra.gmra.mrb[8].mxu0 %vm569_vm7, %v1198_v24 }
 0x65b   :  { %v1269_v25 = vpop.f32.mrb[6].mxu0 }
 0x65c   :  { %v1349_v26 = vrot.slane %v1269_v25, %v2180_v60  ;;  %v1714_v27 = vpop.f32.mrb[7].mxu0 }
 0x65e   :  { %v1350_v28 = vmul.f32 %v1349_v26, %v1003_v52  ;;  %v1351_v29 = vmul.f32 %v1671_v49, %v1349_v26 }
 0x65f   :  { %v1342_v30 = vpop.f32.mrb[8].mxu0 }
 0x660   :  { %v1355_v31 = vrot.slane %v1342_v30, %v2180_v60  ;;  %v1719_v32 = vpop.f32.mrb[9].mxu0 }
 0x662   :  { %v1356_v33 = vadd.f32 %v1355_v31, %v1350_v28  ;;  %v1357_v34 = vadd.f32 %v1355_v31, %v1351_v29 }
 0x664   :  { %v1358_v35 = vmax.f32 %v1356_v33, 0.0  ;;  %v1359_v36 = vmax.f32 %v1357_v34, 0.0 }
 0x666   :  { %1360 = vst.msk [vmem:[#allocation9] sm:$0xff] %vm381_vm6, %v1358_v35  ;;  %1361 = vst.msk [vmem:[#allocation9 + $0x8] sm:$0xff] %vm381_vm6, %v1359_v36 }
 0x667   :  { %1947 = shalt.err (!%p1944_p6)
}
 0x668   :  { %s1948_s13 = scalar_lea.hbm %s2280_s11, 256 }
 0x669   :  { %p1949_p7 = scmp.ne.s32.totalorder %s2280_s11, %s1948_s13  ;;  %p1952_p8 = scmp.lt.u32.totalorder %s1948_s13, %s2280_s11 }
 0x66b   :  { %p1954_p9 = pnand %p1952_p8, %p1949_p7 }
 0x66d   :  { %1957 = shalt.err (!%p1954_p9)
}
 0x66e   :  { %1373 = dma.vmem_to_hbm [thread:$0]  %s1368_s10, 256, %s2280_s11, [#allocation6], %s1965_s27, %s1965_s27, %s1966_s28  }
 0x66f   :  { %1962 = dma.done.wait [#allocation6], 256  }
 0x670   :  { %1963 = vsyncadd [#allocation6], 4294967040 }
 0x671   :  { %1377 = vsyncpa [#allocation5], 1 }
 0x672   :  { %1378 = vsyncpa [#allocation8], 1 }
 0x673   :  { %1379 = vsyncpa [#allocation6], 1 }

</bundles_post_ra>
